<compile_context>
chip_gen: v7x
topology: tpu7x:2x2x1
jax: 0.10.0
libtpu: 0.0.40
codegen_flags: <defaults>
</compile_context>

<pallas_src>
import math
import functools

import jax
import jax.numpy as jnp
from jax.experimental import pallas as pl
from jax.experimental.pallas import tpu as pltpu


def _round_up(a: int, m: int) -> int:
    return ((a + m - 1) // m) * m


def _token_epinet_kernel(x_ref, idx_ref, tgt_ref, msk_ref,
                         wpx_ref, wpi_ref, bp_ref,
                         wlx_ref, wli_ref, bl_ref,
                         tags_ref, nll_ref, cnt_ref):
    x = x_ref[...]        # (TN, in_sz)  bf16
    idx = idx_ref[...]    # (TN, idx_sz) bf16

    # Split-K matmuls (x | indices) — the concatenated activation never exists
    # in HBM.  bf16 x bf16 on the MXU, f32 accumulate; bias add in f32.
    p_tags = (jnp.dot(x, wpx_ref[...], preferred_element_type=jnp.float32)
              + jnp.dot(idx, wpi_ref[...], preferred_element_type=jnp.float32)
              + bp_ref[...])                                            # (TN, T) f32
    l_tags = (jnp.dot(x, wlx_ref[...], preferred_element_type=jnp.float32)
              + jnp.dot(idx, wli_ref[...], preferred_element_type=jnp.float32)
              + bl_ref[...])                                            # (TN, T) f32

    # Averaged tag logits:  (p_tags + l_tags) / 2
    tags_ref[...] = ((p_tags + l_tags) * 0.5).astype(tags_ref.dtype)

    tgt = tgt_ref[...]    # (TN, 1) int32
    msk = msk_ref[...]    # (TN, 1) f32   (padded rows have mask == 0)

    # One-hot over the tag lanes, built ONCE per tile and reused by both heads.
    lane = jax.lax.broadcasted_iota(jnp.int32, p_tags.shape, 1)
    onehot = (lane == tgt).astype(jnp.float32)

    def nll(logits):
        # log-softmax over the tag axis (lanes), f32 throughout
        m = jnp.max(logits, axis=-1, keepdims=True)
        z = logits - m
        lse = jnp.log(jnp.sum(jnp.exp(z), axis=-1, keepdims=True))
        # -log p(target) = lse - z[target]
        return jnp.sum((lse - z) * onehot, axis=-1, keepdims=True)      # (TN, 1)

    # Per-tile partial sums; final reduce/divide happens in the wrapper so the
    # grid axis stays free of carried state (=> "parallel" / megacore).
    nll_ref[...] = jnp.broadcast_to(
        jnp.sum((nll(p_tags) + nll(l_tags)) * msk), (1, 1, 1))
    cnt_ref[...] = jnp.broadcast_to(jnp.sum(msk), (1, 1, 1))


@functools.partial(jax.jit, static_argnames=("block_rows",))
def token_epinet_forward(x, indices, mask, target_tag, wp, bp, wl, bl,
                         *, block_rows: int = 1024):
    """x: (B, S, input_size), indices: (B, S, index_size),
    mask: (B, S) in {0,1}, target_tag: (B, S) int labels,
    wp/wl: (D, num_tag) (transposed vs. torch), bp/bl: (num_tag,)."""
    B, S, in_sz = x.shape
    idx_sz = indices.shape[-1]
    T = wp.shape[1]
    N = B * S

    # Tile the token axis; multiples of 16 for bf16 sublane packing.
    tn = _round_up(min(block_rows, _round_up(N, 16)), 16)
    num_tiles = pl.cdiv(N, tn)
    n_pad = num_tiles * tn

    def pad_rows(a):
        pad = n_pad - a.shape[0]
        if pad:
            a = jnp.pad(a, ((0, pad),) + ((0, 0),) * (a.ndim - 1))
        return a

    # bf16 activation stream (halves HBM bytes of the dominant input); labels
    # int32; mask f32 (padded rows get mask 0 so they never touch the loss).
    x2 = pad_rows(x.reshape(N, in_sz).astype(jnp.bfloat16))
    i2 = pad_rows(indices.reshape(N, idx_sz).astype(jnp.bfloat16))
    tgt2 = pad_rows(target_tag.reshape(N, 1).astype(jnp.int32))
    msk2 = pad_rows(mask.reshape(N, 1).astype(jnp.float32))

    # Weights split by K (x-part / indices-part), bf16; biases stay f32.
    wpx = wp[:in_sz].astype(jnp.bfloat16)
    wpi = wp[in_sz:].astype(jnp.bfloat16)
    wlx = wl[:in_sz].astype(jnp.bfloat16)
    wli = wl[in_sz:].astype(jnp.bfloat16)
    bp2 = bp.reshape(1, T).astype(jnp.float32)
    bl2 = bl.reshape(1, T).astype(jnp.float32)

    row_spec = lambda last: pl.BlockSpec((tn, last), lambda i: (i, 0))
    resident = lambda shape: pl.BlockSpec(shape, lambda i: (0, 0))

    tags_p, nll_parts, cnt_parts = pl.pallas_call(
        _token_epinet_kernel,
        out_shape=(jax.ShapeDtypeStruct((n_pad, T), jnp.float32),
                   jax.ShapeDtypeStruct((num_tiles, 1, 1), jnp.float32),
                   jax.ShapeDtypeStruct((num_tiles, 1, 1), jnp.float32)),
        grid_spec=pl.GridSpec(
            grid=(num_tiles,),
            in_specs=[
                row_spec(in_sz),                 # x rows          (streamed)
                row_spec(idx_sz),                # indices rows    (streamed)
                row_spec(1),                     # target labels   (streamed)
                row_spec(1),                     # mask            (streamed)
                resident((in_sz, T)),            # prior weight (x part)
                resident((idx_sz, T)),           # prior weight (idx part)
                resident((1, T)),                # prior bias
                resident((in_sz, T)),            # learnable weight (x part)
                resident((idx_sz, T)),           # learnable weight (idx part)
                resident((1, T)),                # learnable bias
            ],
            out_specs=(pl.BlockSpec((tn, T), lambda i: (i, 0)),
                       pl.BlockSpec((1, 1, 1), lambda i: (i, 0, 0)),
                       pl.BlockSpec((1, 1, 1), lambda i: (i, 0, 0))),
        ),
        compiler_params=pltpu.CompilerParams(
            dimension_semantics=("parallel",)),   # no carried state across tiles
    )(x2, i2, tgt2, msk2, wpx, wpi, bp2, wlx, wli, bl2)

    tags = tags_p[:N].reshape(B, S, T)
    denom = jnp.maximum(jnp.sum(cnt_parts), 1.0)
    loss = 0.5 * jnp.sum(nll_parts) / denom
    return tags, loss


def _reference_forward(x, indices, mask, target_tag, wp, bp, wl, bl):
    """Pure-JAX reference (inputs rounded to bf16 to match the kernel's
    matmul precision; accumulation and CE math in f32)."""
    f32 = jnp.float32
    B, S, _ = x.shape
    T = wp.shape[1]
    xi = jnp.concatenate([x, indices], axis=-1)
    xi = xi.astype(jnp.bfloat16).astype(f32).reshape(B * S, -1)
    wpb = wp.astype(jnp.bfloat16).astype(f32)
    wlb = wl.astype(jnp.bfloat16).astype(f32)

    p = xi @ wpb + bp
    l = xi @ wlb + bl
    tgt = target_tag.reshape(-1)
    msk = mask.reshape(-1).astype(f32)

    def ce(logits):
        logp = jax.nn.log_softmax(logits, axis=-1)
        nll = -jnp.take_along_axis(logp, tgt[:, None], axis=-1)[:, 0]
        return jnp.sum(nll * msk) / jnp.maximum(jnp.sum(msk), 1.0)

    return ((p + l) * 0.5).reshape(B, S, T), (ce(p) + ce(l)) * 0.5


if __name__ == "__main__":
    # Small shapes consistent with the module's forward (N not a tile multiple
    # so the padding + multi-tile + partial-loss paths are exercised).
    B, S = 2, 9
    input_size, index_size = 32, 8
    num_tag, num_pos = 6, 4        # num_pos unused by forward()
    D = input_size + index_size

    key = jax.random.PRNGKey(0)
    kwp, kbp, kwl, kbl, kx, ki, km, kt = jax.random.split(key, 8)

    # Deterministic parameter init (shapes per nn.Linear(input_size+index_size, num_tag)).
    # Weights stored transposed: (D, num_tag).
    bound = 1.0 / math.sqrt(D)                       # torch default Linear init bound
    wp = jax.random.uniform(kwp, (D, num_tag), minval=-bound, maxval=bound, dtype=jnp.float32)
    bp = jax.random.uniform(kbp, (num_tag,), minval=-bound, maxval=bound, dtype=jnp.float32)
    xlim = math.sqrt(6.0 / (D + num_tag))            # xavier_uniform_ for learnable weight
    wl = jax.random.uniform(kwl, (D, num_tag), minval=-xlim, maxval=xlim, dtype=jnp.float32)
    bl = jax.random.uniform(kbl, (num_tag,), minval=-bound, maxval=bound, dtype=jnp.float32)

    # Deterministic example inputs.
    x = jax.random.normal(kx, (B, S, input_size), dtype=jnp.float32)
    indices = jax.random.normal(ki, (B, S, index_size), dtype=jnp.float32)
    mask = (jax.random.uniform(km, (B, S)) > 0.3).astype(jnp.float32)
    target_tag = jax.random.randint(kt, (B, S), 0, num_tag, dtype=jnp.int32)
    target_pos = jax.random.randint(kt, (B, S), 0, num_pos, dtype=jnp.int32)  # unused by forward

    # block_rows=16 -> 2 grid tiles + row padding at these toy shapes
    # (default 1024 for production-sized N).
    tags, loss = token_epinet_forward(x, indices, mask, target_tag,
                                      wp, bp, wl, bl, block_rows=16)
    tags, loss = jax.block_until_ready((tags, loss))

    ref_tags, ref_loss = _reference_forward(x, indices, mask, target_tag, wp, bp, wl, bl)
    assert jnp.allclose(tags, ref_tags, atol=1e-4, rtol=1e-4), "tags mismatch"
    assert jnp.allclose(loss, ref_loss, atol=1e-4, rtol=1e-4), "loss mismatch"

    print("KERNEL_OK")
</pallas_src>

<mosaic_0001>
module attributes {stable_mosaic.version = 11 : i64} {
  func.func @_token_epinet_kernel(%arg0: i32, %arg1: memref<16x32xbf16, #tpu.memory_space<vmem>>, %arg2: memref<16x8xbf16, #tpu.memory_space<vmem>>, %arg3: memref<16x1xi32, #tpu.memory_space<vmem>>, %arg4: memref<16x1xf32, #tpu.memory_space<vmem>>, %arg5: memref<32x6xbf16, #tpu.memory_space<vmem>>, %arg6: memref<8x6xbf16, #tpu.memory_space<vmem>>, %arg7: memref<1x6xf32, #tpu.memory_space<vmem>>, %arg8: memref<32x6xbf16, #tpu.memory_space<vmem>>, %arg9: memref<8x6xbf16, #tpu.memory_space<vmem>>, %arg10: memref<1x6xf32, #tpu.memory_space<vmem>>, %arg11: memref<16x6xf32, #tpu.memory_space<vmem>>, %arg12: memref<1x1x1xf32, #tpu.memory_space<vmem>>, %arg13: memref<1x1x1xf32, #tpu.memory_space<vmem>>) attributes {dimension_semantics = [#tpu.dimension_semantics<parallel>], iteration_bounds = array<i64: 2>, scalar_prefetch = 0 : i64, scratch_operands = 0 : i64, tpu.core_type = #tpu.core_type<tc>, window_params = [{transform_indices = @transform_0, window_bounds = array<i64: 16, 32>}, {transform_indices = @transform_1, window_bounds = array<i64: 16, 8>}, {transform_indices = @transform_2, window_bounds = array<i64: 16, 1>}, {transform_indices = @transform_3, window_bounds = array<i64: 16, 1>}, {pipeline_mode = #tpu.pipeline_mode<synchronous>, transform_indices = @transform_4, window_bounds = array<i64: 32, 6>}, {pipeline_mode = #tpu.pipeline_mode<synchronous>, transform_indices = @transform_5, window_bounds = array<i64: 8, 6>}, {pipeline_mode = #tpu.pipeline_mode<synchronous>, transform_indices = @transform_6, window_bounds = array<i64: 1, 6>}, {pipeline_mode = #tpu.pipeline_mode<synchronous>, transform_indices = @transform_7, window_bounds = array<i64: 32, 6>}, {pipeline_mode = #tpu.pipeline_mode<synchronous>, transform_indices = @transform_8, window_bounds = array<i64: 8, 6>}, {pipeline_mode = #tpu.pipeline_mode<synchronous>, transform_indices = @transform_9, window_bounds = array<i64: 1, 6>}, {transform_indices = @transform_10, window_bounds = array<i64: 16, 6>}, {transform_indices = @transform_11, window_bounds = array<i64: 1, 1, 1>}, {transform_indices = @transform_12, window_bounds = array<i64: 1, 1, 1>}]} {
    %c0 = arith.constant 0 : index
    %c0_0 = arith.constant 0 : index
    %0 = vector.load %arg1[%c0, %c0_0] : memref<16x32xbf16, #tpu.memory_space<vmem>>, vector<16x32xbf16>
    %c0_1 = arith.constant 0 : index
    %c0_2 = arith.constant 0 : index
    %1 = vector.load %arg2[%c0_1, %c0_2] : memref<16x8xbf16, #tpu.memory_space<vmem>>, vector<16x8xbf16>
    %c0_3 = arith.constant 0 : index
    %c0_4 = arith.constant 0 : index
    %2 = vector.load %arg5[%c0_3, %c0_4] : memref<32x6xbf16, #tpu.memory_space<vmem>>, vector<32x6xbf16>
    %cst = arith.constant dense<0.000000e+00> : vector<16x6xf32>
    %3 = tpu.matmul %0, %2, %cst {dimension_numbers = #tpu.dot_dimension_numbers<[1], [0], [0], [1], [0, 0, 1, 1], [], []>} : vector<16x32xbf16>, vector<32x6xbf16>, vector<16x6xf32> -> vector<16x6xf32>
    %c0_5 = arith.constant 0 : index
    %c0_6 = arith.constant 0 : index
    %4 = vector.load %arg6[%c0_5, %c0_6] : memref<8x6xbf16, #tpu.memory_space<vmem>>, vector<8x6xbf16>
    %cst_7 = arith.constant dense<0.000000e+00> : vector<16x6xf32>
    %5 = tpu.matmul %1, %4, %cst_7 {dimension_numbers = #tpu.dot_dimension_numbers<[1], [0], [0], [1], [0, 0, 1, 1], [], []>} : vector<16x8xbf16>, vector<8x6xbf16>, vector<16x6xf32> -> vector<16x6xf32>
    %6 = arith.addf %3, %5 : vector<16x6xf32>
    %c0_8 = arith.constant 0 : index
    %c0_9 = arith.constant 0 : index
    %7 = vector.load %arg7[%c0_8, %c0_9] : memref<1x6xf32, #tpu.memory_space<vmem>>, vector<1x6xf32>
    %8 = vector.broadcast %7 : vector<1x6xf32> to vector<16x6xf32>
    %9 = arith.addf %6, %8 : vector<16x6xf32>
    %c0_10 = arith.constant 0 : index
    %c0_11 = arith.constant 0 : index
    %10 = vector.load %arg8[%c0_10, %c0_11] : memref<32x6xbf16, #tpu.memory_space<vmem>>, vector<32x6xbf16>
    %cst_12 = arith.constant dense<0.000000e+00> : vector<16x6xf32>
    %11 = tpu.matmul %0, %10, %cst_12 {dimension_numbers = #tpu.dot_dimension_numbers<[1], [0], [0], [1], [0, 0, 1, 1], [], []>} : vector<16x32xbf16>, vector<32x6xbf16>, vector<16x6xf32> -> vector<16x6xf32>
    %c0_13 = arith.constant 0 : index
    %c0_14 = arith.constant 0 : index
    %12 = vector.load %arg9[%c0_13, %c0_14] : memref<8x6xbf16, #tpu.memory_space<vmem>>, vector<8x6xbf16>
    %cst_15 = arith.constant dense<0.000000e+00> : vector<16x6xf32>
    %13 = tpu.matmul %1, %12, %cst_15 {dimension_numbers = #tpu.dot_dimension_numbers<[1], [0], [0], [1], [0, 0, 1, 1], [], []>} : vector<16x8xbf16>, vector<8x6xbf16>, vector<16x6xf32> -> vector<16x6xf32>
    %14 = arith.addf %11, %13 : vector<16x6xf32>
    %c0_16 = arith.constant 0 : index
    %c0_17 = arith.constant 0 : index
    %15 = vector.load %arg10[%c0_16, %c0_17] : memref<1x6xf32, #tpu.memory_space<vmem>>, vector<1x6xf32>
    %16 = vector.broadcast %15 : vector<1x6xf32> to vector<16x6xf32>
    %17 = arith.addf %14, %16 : vector<16x6xf32>
    %18 = arith.addf %9, %17 : vector<16x6xf32>
    %cst_18 = arith.constant 5.000000e-01 : f32
    %19 = vector.broadcast %cst_18 : f32 to vector<16x6xf32>
    %20 = arith.mulf %18, %19 : vector<16x6xf32>
    %c0_19 = arith.constant 0 : index
    %c0_20 = arith.constant 0 : index
    %21 = vector.load %arg11[%c0_19, %c0_20] : memref<16x6xf32, #tpu.memory_space<vmem>>, vector<16x6xf32>
    tpu.vector_store %arg11[%c0_19, %c0_20], %20 {strides = array<i32>} : memref<16x6xf32, #tpu.memory_space<vmem>>, vector<16x6xf32>,
    %c0_21 = arith.constant 0 : index
    %c0_22 = arith.constant 0 : index
    %22 = vector.load %arg3[%c0_21, %c0_22] : memref<16x1xi32, #tpu.memory_space<vmem>>, vector<16x1xi32>
    %c0_23 = arith.constant 0 : index
    %c0_24 = arith.constant 0 : index
    %23 = vector.load %arg4[%c0_23, %c0_24] : memref<16x1xf32, #tpu.memory_space<vmem>>, vector<16x1xf32>
    %24 = tpu.iota {dimensions = array<i32: 1>} : vector<16x6xi32>
    %25 = vector.broadcast %22 : vector<16x1xi32> to vector<16x6xi32>
    %26 = arith.cmpi eq, %24, %25 : vector<16x6xi32>
    %27 = arith.extui %26 : vector<16x6xi1> to vector<16x6xi32>
    %28 = arith.sitofp %27 : vector<16x6xi32> to vector<16x6xf32>
    %cst_25 = arith.constant dense<0xFF800000> : vector<16xf32>
    %29 = vector.multi_reduction <maximumf>, %9, %cst_25 [1] : vector<16x6xf32> to vector<16xf32>
    %30 = vector.shape_cast %29 : vector<16xf32> to vector<16x1xf32>
    %31 = vector.broadcast %30 : vector<16x1xf32> to vector<16x6xf32>
    %32 = arith.subf %9, %31 : vector<16x6xf32>
    %33 = math.exp %32 : vector<16x6xf32>
    %cst_26 = arith.constant dense<0.000000e+00> : vector<16xf32>
    %34 = vector.multi_reduction <add>, %33, %cst_26 [1] : vector<16x6xf32> to vector<16xf32>
    %35 = vector.shape_cast %34 : vector<16xf32> to vector<16x1xf32>
    %36 = math.log %35 : vector<16x1xf32>
    %37 = vector.broadcast %36 : vector<16x1xf32> to vector<16x6xf32>
    %38 = arith.subf %37, %32 : vector<16x6xf32>
    %39 = arith.mulf %38, %28 : vector<16x6xf32>
    %cst_27 = arith.constant dense<0.000000e+00> : vector<16xf32>
    %40 = vector.multi_reduction <add>, %39, %cst_27 [1] : vector<16x6xf32> to vector<16xf32>
    %41 = vector.shape_cast %40 : vector<16xf32> to vector<16x1xf32>
    %cst_28 = arith.constant dense<0xFF800000> : vector<16xf32>
    %42 = vector.multi_reduction <maximumf>, %17, %cst_28 [1] : vector<16x6xf32> to vector<16xf32>
    %43 = vector.shape_cast %42 : vector<16xf32> to vector<16x1xf32>
    %44 = vector.broadcast %43 : vector<16x1xf32> to vector<16x6xf32>
    %45 = arith.subf %17, %44 : vector<16x6xf32>
    %46 = math.exp %45 : vector<16x6xf32>
    %cst_29 = arith.constant dense<0.000000e+00> : vector<16xf32>
    %47 = vector.multi_reduction <add>, %46, %cst_29 [1] : vector<16x6xf32> to vector<16xf32>
    %48 = vector.shape_cast %47 : vector<16xf32> to vector<16x1xf32>
    %49 = math.log %48 : vector<16x1xf32>
    %50 = vector.broadcast %49 : vector<16x1xf32> to vector<16x6xf32>
    %51 = arith.subf %50, %45 : vector<16x6xf32>
    %52 = arith.mulf %51, %28 : vector<16x6xf32>
    %cst_30 = arith.constant dense<0.000000e+00> : vector<16xf32>
    %53 = vector.multi_reduction <add>, %52, %cst_30 [1] : vector<16x6xf32> to vector<16xf32>
    %54 = vector.shape_cast %53 : vector<16xf32> to vector<16x1xf32>
    %55 = arith.addf %41, %54 : vector<16x1xf32>
    %56 = arith.mulf %55, %23 : vector<16x1xf32>
    %57 = vector.shape_cast %56 : vector<16x1xf32> to vector<1x16x1xf32>
    %cst_31 = arith.constant dense<0.000000e+00> : vector<1xf32>
    %58 = vector.multi_reduction <add>, %57, %cst_31 [1, 2] : vector<1x16x1xf32> to vector<1xf32>
    %59 = vector.shape_cast %58 : vector<1xf32> to vector<1x1x1xf32>
    %60 = vector.extract %59[0, 0, 0] : f32 from vector<1x1x1xf32>
    %61 = vector.broadcast %60 : f32 to vector<1x1x1xf32>
    %c0_32 = arith.constant 0 : index
    %c0_33 = arith.constant 0 : index
    %c0_34 = arith.constant 0 : index
    %62 = vector.load %arg12[%c0_32, %c0_33, %c0_34] : memref<1x1x1xf32, #tpu.memory_space<vmem>>, vector<1x1x1xf32>
    tpu.vector_store %arg12[%c0_32, %c0_33, %c0_34], %61 {strides = array<i32>} : memref<1x1x1xf32, #tpu.memory_space<vmem>>, vector<1x1x1xf32>,
    %63 = vector.shape_cast %23 : vector<16x1xf32> to vector<1x16x1xf32>
    %cst_35 = arith.constant dense<0.000000e+00> : vector<1xf32>
    %64 = vector.multi_reduction <add>, %63, %cst_35 [1, 2] : vector<1x16x1xf32> to vector<1xf32>
    %65 = vector.shape_cast %64 : vector<1xf32> to vector<1x1x1xf32>
    %66 = vector.extract %65[0, 0, 0] : f32 from vector<1x1x1xf32>
    %67 = vector.broadcast %66 : f32 to vector<1x1x1xf32>
    %c0_36 = arith.constant 0 : index
    %c0_37 = arith.constant 0 : index
    %c0_38 = arith.constant 0 : index
    %68 = vector.load %arg13[%c0_36, %c0_37, %c0_38] : memref<1x1x1xf32, #tpu.memory_space<vmem>>, vector<1x1x1xf32>
    tpu.vector_store %arg13[%c0_36, %c0_37, %c0_38], %67 {strides = array<i32>} : memref<1x1x1xf32, #tpu.memory_space<vmem>>, vector<1x1x1xf32>,
    return
  }
  func.func @transform_0(%arg0: i32) -> (i32, i32) {
    %c0_i32 = arith.constant 0 : i32
    %c0_i32_0 = arith.constant 0 : i32
    return %arg0, %c0_i32 : i32, i32
  }
  func.func @transform_1(%arg0: i32) -> (i32, i32) {
    %c0_i32 = arith.constant 0 : i32
    %c0_i32_0 = arith.constant 0 : i32
    return %arg0, %c0_i32 : i32, i32
  }
  func.func @transform_2(%arg0: i32) -> (i32, i32) {
    %c0_i32 = arith.constant 0 : i32
    %c0_i32_0 = arith.constant 0 : i32
    return %arg0, %c0_i32 : i32, i32
  }
  func.func @transform_3(%arg0: i32) -> (i32, i32) {
    %c0_i32 = arith.constant 0 : i32
    %c0_i32_0 = arith.constant 0 : i32
    return %arg0, %c0_i32 : i32, i32
  }
  func.func @transform_4(%arg0: i32) -> (i32, i32) {
    %c0_i32 = arith.constant 0 : i32
    %c0_i32_0 = arith.constant 0 : i32
    %c0_i32_1 = arith.constant 0 : i32
    return %c0_i32, %c0_i32_0 : i32, i32
  }
  func.func @transform_5(%arg0: i32) -> (i32, i32) {
    %c0_i32 = arith.constant 0 : i32
    %c0_i32_0 = arith.constant 0 : i32
    %c0_i32_1 = arith.constant 0 : i32
    return %c0_i32, %c0_i32_0 : i32, i32
  }
  func.func @transform_6(%arg0: i32) -> (i32, i32) {
    %c0_i32 = arith.constant 0 : i32
    %c0_i32_0 = arith.constant 0 : i32
    %c0_i32_1 = arith.constant 0 : i32
    return %c0_i32, %c0_i32_0 : i32, i32
  }
  func.func @transform_7(%arg0: i32) -> (i32, i32) {
    %c0_i32 = arith.constant 0 : i32
    %c0_i32_0 = arith.constant 0 : i32
    %c0_i32_1 = arith.constant 0 : i32
    return %c0_i32, %c0_i32_0 : i32, i32
  }
  func.func @transform_8(%arg0: i32) -> (i32, i32) {
    %c0_i32 = arith.constant 0 : i32
    %c0_i32_0 = arith.constant 0 : i32
    %c0_i32_1 = arith.constant 0 : i32
    return %c0_i32, %c0_i32_0 : i32, i32
  }
  func.func @transform_9(%arg0: i32) -> (i32, i32) {
    %c0_i32 = arith.constant 0 : i32
    %c0_i32_0 = arith.constant 0 : i32
    %c0_i32_1 = arith.constant 0 : i32
    return %c0_i32, %c0_i32_0 : i32, i32
  }
  func.func @transform_10(%arg0: i32) -> (i32, i32) {
    %c0_i32 = arith.constant 0 : i32
    %c0_i32_0 = arith.constant 0 : i32
    return %arg0, %c0_i32 : i32, i32
  }
  func.func @transform_11(%arg0: i32) -> (i32, i32, i32) {
    %c0_i32 = arith.constant 0 : i32
    %c0_i32_0 = arith.constant 0 : i32
    %c0_i32_1 = arith.constant 0 : i32
    return %arg0, %c0_i32, %c0_i32_0 : i32, i32, i32
  }
  func.func @transform_12(%arg0: i32) -> (i32, i32, i32) {
    %c0_i32 = arith.constant 0 : i32
    %c0_i32_0 = arith.constant 0 : i32
    %c0_i32_1 = arith.constant 0 : i32
    return %arg0, %c0_i32, %c0_i32_0 : i32, i32, i32
  }
}

</mosaic_0001>

<bundles_post_ra>
// kernel: token_epinet_forward.1
= control target key start
LH: loop header
LB: loop body
LE: loop exit
PB: predicated region body
PF: predicated region fallthrough
CT: control target
= control target key end

     0   :  { %s1195_s21 = smov 0   ;;  %s1297_s0 = inlined_call_operand.vmem [shape: bf16[32,32], index: 0, kind: input, shape index: {}]   ;;  %s1298_s1 = inlined_call_operand.vmem [shape: bf16[32,8], index: 1, kind: input, shape index: {}]   ;;  %s1299_s2 = inlined_call_operand.vmem [shape: s32[32,1], index: 2, kind: input, shape index: {}]   ;;  %s1300_s3 = inlined_call_operand.vmem [shape: f32[32,1], index: 3, kind: input, shape index: {}]   ;;  %s1301_s4 = inlined_call_operand.vmem [shape: bf16[32,6], index: 4, kind: input, shape index: {}]   ;;  %s1302_s5 = inlined_call_operand.vmem [shape: bf16[8,6], index: 5, kind: input, shape index: {}]   ;;  %s1303_s6 = inlined_call_operand.vmem [shape: f32[1,6], index: 6, kind: input, shape index: {}]   ;;  %s1304_s7 = inlined_call_operand.vmem [shape: bf16[32,6], index: 7, kind: input, shape index: {}]   ;;  %s1305_s8 = inlined_call_operand.vmem [shape: bf16[8,6], index: 8, kind: input, shape index: {}]   ;;  %s1306_s9 = inlined_call_operand.vmem [shape: f32[1,6], index: 9, kind: input, shape index: {}]   ;;  %s1307_s10 = inlined_call_operand.vmem [shape: f32[32,6], index: 10, kind: output, shape index: {0}]   ;;  %s1308_s11 = inlined_call_operand.vmem [shape: f32[2,1,1], index: 11, kind: output, shape index: {1}]   ;;  %s1309_s12 = inlined_call_operand.vmem [shape: f32[2,1,1], index: 12, kind: output, shape index: {2}]  }
   0x1 LB: > { %s1201_s22 = sadd.s32 4294967295, %s1125_s21   ;;  %p1015_p0 = scmp.ge.s32.totalorder %s1125_s21, 1  ;;  %s1125_s21 = sphi %s1195_s21, %s23_s21  }
   0x2   : > { %p401_p1 = scmp.lt.s32.totalorder %s1125_s21, 3 }
   0x4   : > { %p402_p2 = pnand %p1015_p0, %p401_p1 }
   0x5   : > { %v1097_v0 = vld [vmem:[%s1301_s4] sm:$0xff] (!%p402_p2)   ;;  %v1127_v1 = vmov (!%p402_p2), 0.0   ;;  %vm519_vm0 = vcmask (!%p402_p2), 1043456   ;;  %v1098_v4 = vld [vmem:[%s1301_s4 + $0x8] sm:$0xff] (!%p402_p2)   ;;  %s1016_s29 = sshll.u32 (!%p402_p2), %s1201_s22, 1  ;;  %vm1128_vm1 = vmmov (!%p402_p2), 0  }
   0x6   : > { %405 = sbr.rel (%p402_p2) target bundleno = 924 (0x39c), region = 60  ;;  %1058 = vmatprep.subr.bf16.mxu1 (!%p402_p2), %v1127_v1  ;;  %1052 = vmatprep.subr.bf16.mxu0 (!%p402_p2), %v1127_v1  ;;  %v509_v2 = vld [vmem:[%s1302_s5] sm:$0xf] (!%p402_p2)  ;;  %p465_p3 = scmp.lt.s32.totalorder (!%p402_p2), %s1016_s29, 3  ;;  %vm515_vm2 = vcmask (!%p402_p2), 64512   ;;  %vm581_vm3 = vcmask (!%p402_p2), 261120  }
   0x7   : > { %1059 = vmatpush3.bf16.msra.mxu1 (!%p402_p2), %v1097_v0  ;;  %v521_v3 = vsel (!%p402_p2), %vm519_vm0, %v509_v2, 0  ;;  %1054 = vmatprep.mubr.msk.bf16.mxu0 (!%p402_p2), %vm1128_vm1, %v1127_v1  ;;  %v639_v5 = vld [vmem:[%s1305_s8] sm:$0xf] (!%p402_p2)  ;;  %v1102_v10 = vld [vmem:[%s1304_s7 + $0x8] sm:$0xff] (!%p402_p2)   ;;  %vm750_vm4 = vcmask (!%p402_p2), 48128   ;;  %v1129_v45 = vmov (!%p402_p2), 0  }
   0x8   : > { %1060 = vmatprep.subr.bf16.mxu1 (!%p402_p2), %v1127_v1  ;;  %1053 = vmatpush3.bf16.msra.mxu0 (!%p402_p2), %v521_v3  ;;  %v641_v6 = vsel (!%p402_p2), %vm519_vm0, %v639_v5, 0  ;;  %v1101_v7 = vld [vmem:[%s1304_s7] sm:$0xff] (!%p402_p2)   ;;  %vm839_vm7 = vcmask (!%p402_p2), 7168   ;;  %p494_p4 = scmp.lt.s32.totalorder (!%p402_p2), %s1201_s22, 1  ;;  %vm853_vm8 = vcmask (!%p402_p2), 0  }
   0x9   : > { %1062 = vmatprep.mubr.msk.bf16.mxu1 (!%p402_p2), %vm1128_vm1, %v1127_v1  ;;  %1066 = vmatprep.subr.bf16.mxu0 (!%p402_p2), %v1127_v1  ;;  %v1032_v13 = vld [vmem:[%s1303_s6] ss:$0 sm:$0xff] (!%p402_p2) }
   0xa   : > { %v1037_v27 = vld [vmem:[%s1306_s9] ss:$0 sm:$0xff] (!%p402_p2)  ;;  %1095 = vset.pattern.permute.xlu0 (!%p402_p2), %v1129_v45  ;;  %1096 = vset.pattern.permute.xlu1 (!%p402_p2), %v1129_v45 }
   0xb   : > { %1061 = vmatpush3.bf16.msra.mxu1 (!%p402_p2), %v1098_v4 }
   0xc   : > { %1072 = vmatprep.subr.bf16.mxu1 (!%p402_p2), %v1127_v1 }
   0xd   : > { %s1311_s29 = smov (!%p465_p3, %s1016_s29), 3  ;;  %s1313_s22 = smov (!%p494_p4, %s1201_s22), 1 }
   0xe   : > { %s1017_s14 = sshll.u32 %s1311_s29, 2  ;;  %s496_s27 = scalar_lea.vmem %s1308_s11, %s1313_s22 }
   0xf   : > { %s474_s17 = scalar_lea.vmem %s1298_s1, %s1017_s14  ;;  %s468_s20 = scalar_lea.vmem %s1297_s0, %s1017_s14 }
  0x10   : > { %v1099_v8 = vld [vmem:[%s474_s17] sm:$0xff]   ;;  %s1258_s14 = sshll.u32 %s1311_s29, 3 }
  0x11   : > { %v1100_v9 = vld [vmem:[%s468_s20] sm:$0xff]   ;;  %1055 = vmatmul.mubr.msk.bf16.vlgmr.msra.gmra.mrb[0].mxu0 %vm515_vm2, %v1099_v8  ;;  %s492_s17 = scalar_lea.vmem %s1307_s10, %s1258_s14  ;;  %s480_s19 = scalar_lea.vmem %s1299_s2, %s1258_s14 }
  0x12   : > { %1063 = vmatmul.mubr.msk.bf16.vlgmr.msra.gmra.mrb[0].mxu1 %vm581_vm3, %v1100_v9  ;;  %1067 = vmatpush3.bf16.msra.mxu0 %v641_v6  ;;  %v754_v3 = vld [vmem:[%s480_s19 + $0x8] sm:$0xff]  ;;  %v753_v4 = vld [vmem:[%s480_s19] sm:$0xff]  ;;  %s486_s24 = scalar_lea.vmem %s1300_s3, %s1258_s14  ;;  %s499_s14 = scalar_lea.vmem %s1309_s12, %s1313_s22 }
  0x13   : > { %1073 = vmatpush3.bf16.msra.mxu1 %v1101_v7  ;;  %1068 = vmatprep.mubr.msk.bf16.mxu0 %vm1128_vm1, %v1127_v1 }
  0x14   : > { %1074 = vmatprep.subr.bf16.mxu1 %v1127_v1  ;;  %1076 = vmatprep.mubr.msk.bf16.mxu1 %vm1128_vm1, %v1127_v1 }
  0x17   : > { %1075 = vmatpush3.bf16.msra.mxu1 %v1102_v10 }
  0x19   : > { %1069 = vmatmul.mubr.msk.bf16.vlgmr.msra.gmra.mrb[4].mxu0 %vm515_vm2, %v1099_v8  ;;  %v757_v8 = vlaneseq }
  0x1a   : > { %1077 = vmatmul.mubr.msk.bf16.vlgmr.msra.gmra.mrb[4].mxu1 %vm581_vm3, %v1100_v9 }
  0xe4   : > { %v557_v11 = vpop.f32.mrb[0].mxu0 }
  0xe5   : > { %v619_v12 = vpop.f32.mrb[0].mxu1  ;;  %v1056_v14 = vpop.f32.mrb[1].mxu0 }
  0xe6   : > { %v620_v15 = vadd.f32 %v619_v12, %v557_v11  ;;  %v1064_v16 = vpop.f32.mrb[1].mxu1  ;;  %v560_v17 = vpop.f32.mrb[2].mxu0  ;;  %v758_v12 = vand.u32 127, %v757_v8 }
  0xe7   : > { %v622_v18 = vpop.f32.mrb[2].mxu1  ;;  %v1057_v19 = vpop.f32.mrb[3].mxu0 }
  0xe8   : > { %v633_v20 = vadd.f32 %v1032_v13, %v620_v15  ;;  %v623_v21 = vadd.f32 %v622_v18, %v560_v17  ;;  %v1065_v22 = vpop.f32.mrb[3].mxu1 }
  0xea   : > { %v634_v23 = vadd.f32 %v1032_v13, %v623_v21  ;;  %v771_v24 = vsel %vm750_vm4, %v633_v20, -inf }
  0xeb   : > { %772 = vmax.xlane.f32.xlu0 %v771_v24 }
  0xec   : > { %v677_v25 = vpop.f32.mrb[4].mxu0  ;;  %v774_v32 = vsel %vm750_vm4, %v634_v23, -inf }
  0xed   : > { %v730_v26 = vpop.f32.mrb[4].mxu1  ;;  %v1070_v28 = vpop.f32.mrb[5].mxu0 }
  0xee   : > { %v731_v29 = vadd.f32 %v730_v26, %v677_v25  ;;  %v1078_v30 = vpop.f32.mrb[5].mxu1  ;;  %v680_v31 = vpop.f32.mrb[6].mxu0 }
  0xef   : > { %775 = vmax.xlane.f32.xlu0 %v774_v32  ;;  %v733_v33 = vpop.f32.mrb[6].mxu1  ;;  %v1071_v34 = vpop.f32.mrb[7].mxu0 }
  0xf0   : > { %v744_v35 = vadd.f32 %v1037_v27, %v731_v29  ;;  %v734_v36 = vadd.f32 %v733_v33, %v680_v31  ;;  %v1079_v37 = vpop.f32.mrb[7].mxu1 }
  0xf1   : > { %v755_v37 = vld [vmem:[%s486_s24] sm:$0xff] }
  0xf2   : > { %v746_v38 = vadd.f32 %v744_v35, %v633_v20  ;;  %v745_v39 = vadd.f32 %v1037_v27, %v734_v36  ;;  %v803_v40 = vsel %vm750_vm4, %v744_v35, -inf }
  0xf3   : > { %804 = vmax.xlane.f32.xlu1 %v803_v40 }
  0xf4   : > { %v748_v41 = vmul.f32 0.5, %v746_v38  ;;  %v747_v42 = vadd.f32 %v745_v39, %v634_v23  ;;  %v806_v44 = vsel %vm750_vm4, %v745_v39, -inf }
  0xf6   : > { %v749_v43 = vmul.f32 0.5, %v747_v42  ;;  %751 = vst.msk [vmem:[%s492_s17] sm:$0xff] %vm750_vm4, %v748_v41 }
  0xf7   : > { %807 = vmax.xlane.f32.xlu1 %v806_v44 }
  0xf8   : > { %752 = vst.msk [vmem:[%s492_s17 + $0x8] sm:$0xff] %vm750_vm4, %v749_v43 }
 0x178   : > { %v773_v46 = vpop.xlane.xlu0 %772 }
 0x179   : > { %v777_v47 = vsub.f32 %v633_v20, %v773_v46  ;;  %v855_v46 = vsel %vm839_vm7, %v755_v37, 0.0 }
 0x17b   : > { %v779_v48 = vmul.f32 1.442695, %v777_v47 }
 0x17c   : > { %v776_v49 = vpop.xlane.xlu0 %775 }
 0x17d   : > { %1103 = vpow2.f32 %v779_v48  ;;  %v778_v50 = vsub.f32 %v634_v23, %v776_v49 }
 0x17f   : > { %v781_v51 = vmul.f32 1.442695, %v778_v50 }
 0x180   : > { %v805_v52 = vpop.xlane.xlu1 %804 }
 0x181   : > { %1105 = vpow2.f32 %v781_v51  ;;  %v809_v53 = vsub.f32 %v744_v35, %v805_v52 }
 0x183   : > { %v811_v54 = vmul.f32 1.442695, %v809_v53 }
 0x184   : > { %v808_v55 = vpop.xlane.xlu1 %807 }
 0x185   : > { %1107 = vpow2.f32 %v811_v54  ;;  %v810_v56 = vsub.f32 %v745_v39, %v808_v55  ;;  %v756_v39 = vld [vmem:[%s486_s24 + $0x8] sm:$0xff] }
 0x187   : > { %v1104_v57 = vpop.eup %1103  ;;  %v813_v58 = vmul.f32 1.442695, %v810_v56 }
 0x188   : > { %v783_v59 = vsel %vm750_vm4, %v1104_v57, 0.0 }
 0x189   : > { %1109 = vpow2.f32 %v813_v58  ;;  %784 = vadd.xlane.f32.xlu0 %v783_v59 }
 0x18b   : > { %v1106_v60 = vpop.eup %1105 }
 0x18c   : > { %v786_v61 = vsel %vm750_vm4, %v1106_v60, 0.0 }
 0x18d   : > { %787 = vadd.xlane.f32.xlu1 %v786_v61 }
 0x18f   : > { %v1108_v62 = vpop.eup %1107 }
 0x190   : > { %v815_v63 = vsel %vm750_vm4, %v1108_v62, 0.0 }
 0x191   : > { %816 = vadd.xlane.f32.xlu0 %v815_v63 }
 0x193   : > { %v1110_v0 = vpop.eup %1109 }
 0x194   : > { %v818_v2 = vsel %vm750_vm4, %v1110_v0, 0.0 }
 0x195   : > { %819 = vadd.xlane.f32.xlu1 %v818_v2 }
 0x1a6   : > { %763 = vperm.xlu1 %1096, %v754_v3  }
 0x1a7   : > { %760 = vperm.xlu0 %1095, %v753_v4  }
 0x216   : > { %v785_v5 = vpop.xlane.xlu0 %784 }
 0x217   : > { %1111 = vlog2.f32 %v785_v5 }
 0x21a   : > { %v788_v6 = vpop.xlane.xlu1 %787 }
 0x21b   : > { %1113 = vlog2.f32 %v788_v6 }
 0x21e   : > { %v817_v7 = vpop.xlane.xlu0 %816 }
 0x21f   : > { %1115 = vlog2.f32 %v817_v7 }
 0x221   : > { %v1112_v9 = vpop.eup %1111 }
 0x222   : > { %v820_v10 = vpop.xlane.xlu1 %819  ;;  %v790_v11 = vmul.f32 0.6931472, %v1112_v9 }
 0x223   : > { %1117 = vlog2.f32 %v820_v10 }
 0x224   : > { %v793_v17 = vsub.f32 %v790_v11, %v777_v47  ;;  %v856_v47 = vsel %vm839_vm7, %v756_v39, 0.0 }
 0x225   : > { %v1114_v13 = vpop.eup %1113  ;;  %v857_v49 = vadd.f32 %v856_v47, %v855_v46 }
 0x226   : > { %v792_v14 = vmul.f32 0.6931472, %v1114_v13  ;;  %v761_v15 = vpop.permute.xlu0 %760  ;;  %v764_v16 = vpop.permute.xlu1 %763 }
 0x227   : > { %vm765_vm5 = vcmp.eq.s32.totalorder %v758_v12, %v761_v15  ;;  %vm766_vm6 = vcmp.eq.s32.totalorder %v758_v12, %v764_v16 }
 0x228   : > { %v1038_v18 = vsel %vm765_vm5, 1.0, %v1127_v1  ;;  %v1039_v19 = vsel %vm766_vm6, 1.0, %v1127_v1  ;;  %v794_v20 = vsub.f32 %v792_v14, %v778_v50 }
 0x229   : > { %v1116_v21 = vpop.eup %1115  ;;  %v795_v22 = vmul.f32 %v1038_v18, %v793_v17 }
 0x22a   : > { %v822_v23 = vmul.f32 0.6931472, %v1116_v21  ;;  %v796_v24 = vmul.f32 %v1039_v19, %v794_v20 }
 0x22b   : > { %v797_v25 = vsel %vm750_vm4, %v795_v22, 0.0 }
 0x22c   : > { %798 = vadd.xlane.f32.xlu1 %v797_v25  ;;  %v800_v26 = vsel %vm750_vm4, %v796_v24, 0.0  ;;  %v825_v27 = vsub.f32 %v822_v23, %v809_v53 }
 0x22d   : > { %v1118_v28 = vpop.eup %1117  ;;  %801 = vadd.xlane.f32.xlu0 %v800_v26 }
 0x22e   : > { %v824_v29 = vmul.f32 0.6931472, %v1118_v28  ;;  %v827_v30 = vmul.f32 %v1038_v18, %v825_v27 }
 0x230   : > { %v829_v31 = vsel %vm750_vm4, %v827_v30, 0.0  ;;  %v826_v32 = vsub.f32 %v824_v29, %v810_v56 }
 0x231   : > { %830 = vadd.xlane.f32.xlu1 %v829_v31 }
 0x232   : > { %v828_v1 = vmul.f32 %v1039_v19, %v826_v32 }
 0x234   : > { %v832_v33 = vsel %vm750_vm4, %v828_v1, 0.0 }
 0x235   : > { %833 = vadd.xlane.f32.xlu1 %v832_v33 }
 0x2b9   : > { %v799_v34 = vpop.xlane.xlu1 %798 }
 0x2ba   : > { %v802_v38 = vpop.xlane.xlu0 %801 }
 0x2be   : > { %v831_v35 = vpop.xlane.xlu1 %830 }
 0x2bf   : > { %v835_v36 = vadd.f32 %v831_v35, %v799_v34 }
 0x2c1   : > { %v837_v41 = vmul.f32 %v835_v36, %v755_v37 }
 0x2c2   : > { %v834_v40 = vpop.xlane.xlu1 %833 }
 0x2c3   : > { %v836_v42 = vadd.f32 %v834_v40, %v802_v38  ;;  %v840_v44 = vsel %vm839_vm7, %v837_v41, 0.0 }
 0x2c5   : > { %v838_v43 = vmul.f32 %v836_v42, %v756_v39 }
 0x2c7   : > { %v841_v45 = vsel %vm839_vm7, %v838_v43, 0.0 }
 0x2c8   : > { %v842_v48 = vadd.f32 %v841_v45, %v840_v44 }
 0x2ca   : > { %843 = vadd.xlane.f32.xlu1 %v842_v48 }
 0x2ce   : > { %858 = vadd.xlane.f32.xlu1 %v857_v49 }
 0x357   : > { %v844_v50 = vpop.xlane.xlu1 %843 }
 0x358   : > { %v845_v51 = vrot.slane %v844_v50, 4 }
 0x35a   : > { %v846_v52 = vadd.f32 %v845_v51, %v844_v50 }
 0x35b   : > { %v859_v53 = vpop.xlane.xlu1 %858 }
 0x35c   : > { %v847_v54 = vrot.slane %v846_v52, 2  ;;  %v860_v55 = vrot.slane %v859_v53, 4 }
 0x35e   : > { %v861_v56 = vadd.f32 %v860_v55, %v859_v53  ;;  %v848_v57 = vadd.f32 %v847_v54, %v846_v52 }
 0x360   : > { %v862_v58 = vrot.slane %v861_v56, 2  ;;  %v849_v59 = vrot.slane %v848_v57, 1 }
 0x362   : > { %v863_v60 = vadd.f32 %v862_v58, %v861_v56  ;;  %v850_v61 = vadd.f32 %v849_v59, %v848_v57 }
 0x364   : > { %1080 = vpush %v850_v61  ;;  %v864_v62 = vrot.slane %v863_v60, 1 }
 0x366   : > { %v865_v63 = vadd.f32 %v864_v62, %v863_v60 }
 0x368   : > { %1082 = vpush %v865_v63 }
 0x395   : > { %s1081_s28 = spop %1080 }
 0x396   : > { %v852_v0 = vstv %s1081_s28 }
 0x397   : > { %854 = vst.msk [vmem:[%s496_s27] sm:$0x1] %vm853_vm8, %v852_v0 }
 0x399   : > { %s1083_s15 = spop %1082 }
 0x39a   : > { %v867_v2 = vstv %s1083_s15 }
 0x39b   : > { %868 = vst.msk [vmem:[%s499_s14] sm:$0x1] %vm853_vm8, %v867_v2 }
 0x39c PF: > { %s23_s21 = sadd.s32 1, %s1125_s21  }
 0x39d   : > { %p20_p5 = scmp.ge.s32.totalorder %s23_s21, 4  }
 0x39f   :  { %22 = sbr.rel (!%p20_p5) target bundleno = 1 (0x1), region = 123 }

</bundles_post_ra>
